<compile_context>
chip_gen: v5e
topology: v5e:2x2
jax: 0.10.0
libtpu: 0.0.40
codegen_flags: <defaults>
</compile_context>

<pallas_src>
import math
import jax
import jax.numpy as jnp
from jax.experimental import pallas as pl
from jax.experimental.pallas import tpu as pltpu

SUBLANE = 8


def mlp_kernel(x_ref, w1_ref, b1_ref, w2_ref, b2_ref, w3_ref, b3_ref, o_ref):
    # fc1 + ReLU : bf16 operands (cast just before the dot), f32 accumulate,
    # f32 epilogue.
    x = x_ref[...].astype(w1_ref.dtype)
    h = jnp.dot(x, w1_ref[...], preferred_element_type=jnp.float32)
    h = jnp.maximum(h + b1_ref[...], 0.0)
    # fc2 + ReLU
    h = jnp.dot(h.astype(w2_ref.dtype), w2_ref[...],
                preferred_element_type=jnp.float32)
    h = jnp.maximum(h + b2_ref[...], 0.0)
    # fc3 + Sigmoid
    h = jnp.dot(h.astype(w3_ref.dtype), w3_ref[...],
                preferred_element_type=jnp.float32)
    o_ref[...] = jax.nn.sigmoid(h + b3_ref[...]).astype(o_ref.dtype)


def _round_up(x, m):
    return ((x + m - 1) // m) * m


def _choose_tile_b(batch, desired_tile=1024):
    """Batch tile: multiple of 8, <8 wasted rows in the last tile, and >=2
    grid steps whenever there are >=16 rows (keeps both v7x TCs busy)."""
    b8 = _round_up(max(batch, 1), SUBLANE)
    n_tiles = pl.cdiv(b8, desired_tile)
    if b8 >= 2 * SUBLANE:
        n_tiles = max(n_tiles, 2)
    return _round_up(pl.cdiv(b8, n_tiles), SUBLANE)


def prepare_params(params, matmul_dtype=jnp.bfloat16):
    """One-time parameter prep (outside the per-call forward): cast matmul
    operands to bf16; biases stay f32 with shape [1, n]."""
    w1, b1, w2, b2, w3, b3 = params
    return (w1.astype(matmul_dtype), b1.astype(jnp.float32),
            w2.astype(matmul_dtype), b2.astype(jnp.float32),
            w3.astype(matmul_dtype), b3.astype(jnp.float32))


def mlp_forward(x, prepared_params, *, desired_tile_b=1024):
    """x: [B, input_size] f32.  Weights stored transposed as [in, out]."""
    w1, b1, w2, b2, w3, b3 = prepared_params
    B, in_size = x.shape
    out_size = w3.shape[1]

    tile_b = _choose_tile_b(B, desired_tile_b)
    b_pad = _round_up(B, tile_b)
    x_p = x if b_pad == B else jnp.pad(x, ((0, b_pad - B), (0, 0)))

    grid = (b_pad // tile_b,)
    # Constant block index -> weights/biases stay resident in VMEM across the
    # whole batch loop (no per-step re-DMA).
    resident = lambda a: pl.BlockSpec(a.shape, lambda i: (0, 0))

    out = pl.pallas_call(
        mlp_kernel,
        out_shape=jax.ShapeDtypeStruct((b_pad, out_size), jnp.float32),
        grid=grid,
        in_specs=[
            # True-width activation tile: last dim equals the full array dim.
            pl.BlockSpec((tile_b, in_size), lambda i: (i, 0)),
            resident(w1), resident(b1),
            resident(w2), resident(b2),
            resident(w3), resident(b3),
        ],
        # True-width output: no padded columns, no wrapper slice pass.
        out_specs=pl.BlockSpec((tile_b, out_size), lambda i: (i, 0)),
        compiler_params=pltpu.CompilerParams(
            dimension_semantics=("parallel",)),
    )(x_p, w1, b1, w2, b2, w3, b3)

    return out if b_pad == B else out[:B]


# ---------------- parameter init (matches the PyTorch module) ----------------
def kaiming_uniform(key, fan_in, fan_out):
    # nn.init.kaiming_uniform_ (a=0, fan_in mode, gain=sqrt(2)); stored [in, out].
    bound = math.sqrt(2.0) * math.sqrt(3.0 / fan_in)
    return jax.random.uniform(key, (fan_in, fan_out), jnp.float32, -bound, bound)


def linear_bias(key, fan_in, fan_out):
    # nn.Linear default bias init: U(-1/sqrt(fan_in), 1/sqrt(fan_in)).
    bound = 1.0 / math.sqrt(fan_in)
    return jax.random.uniform(key, (1, fan_out), jnp.float32, -bound, bound)


def init_params(key, input_size, hidden_size, output_size):
    ks = jax.random.split(key, 6)
    w1 = kaiming_uniform(ks[0], input_size, hidden_size)
    b1 = linear_bias(ks[1], input_size, hidden_size)
    w2 = kaiming_uniform(ks[2], hidden_size, 64)
    b2 = linear_bias(ks[3], hidden_size, 64)
    w3 = kaiming_uniform(ks[4], 64, output_size)
    b3 = linear_bias(ks[5], 64, output_size)
    return (w1, b1, w2, b2, w3, b3)


def ref_forward(x, params, matmul_dtype=jnp.float32):
    w1, b1, w2, b2, w3, b3 = params
    dot = lambda a, b: jnp.dot(a.astype(matmul_dtype), b.astype(matmul_dtype),
                               preferred_element_type=jnp.float32)
    h = jnp.maximum(dot(x, w1) + b1, 0.0)
    h = jnp.maximum(dot(h, w2) + b2, 0.0)
    return jax.nn.sigmoid(dot(h, w3) + b3)


if __name__ == "__main__":
    input_size, hidden_size, output_size = 32, 32, 16
    batch = 8

    key = jax.random.PRNGKey(0)
    pkey, xkey = jax.random.split(key)
    params = init_params(pkey, input_size, hidden_size, output_size)
    x = jax.random.normal(xkey, (batch, input_size), jnp.float32)

    prepared = prepare_params(params)           # one-time weight prep
    out = mlp_forward(x, prepared)
    jax.block_until_ready(out)
    assert out.shape == (batch, output_size)

    # Exact-math reference (same bf16-operand / f32-accumulate matmuls).
    ref_bf16 = ref_forward(x, params, jnp.bfloat16)
    assert jnp.allclose(out, ref_bf16, atol=1e-4, rtol=1e-4)

    # Loose check against the pure-f32 forward (bf16 operand rounding only).
    ref_f32 = ref_forward(x, params, jnp.float32)
    assert jnp.allclose(out, ref_f32, atol=3e-2, rtol=3e-2)

    print("KERNEL_OK")
</pallas_src>

<mosaic_0001>
module attributes {stable_mosaic.version = 11 : i64} {
  func.func @mlp_kernel(%arg0: i32, %arg1: memref<8x32xf32, #tpu.memory_space<vmem>>, %arg2: memref<32x32xbf16, #tpu.memory_space<vmem>>, %arg3: memref<1x32xf32, #tpu.memory_space<vmem>>, %arg4: memref<32x64xbf16, #tpu.memory_space<vmem>>, %arg5: memref<1x64xf32, #tpu.memory_space<vmem>>, %arg6: memref<64x16xbf16, #tpu.memory_space<vmem>>, %arg7: memref<1x16xf32, #tpu.memory_space<vmem>>, %arg8: memref<8x16xf32, #tpu.memory_space<vmem>>) attributes {dimension_semantics = [#tpu.dimension_semantics<parallel>], iteration_bounds = array<i64: 1>, scalar_prefetch = 0 : i64, scratch_operands = 0 : i64, tpu.core_type = #tpu.core_type<tc>, window_params = [{transform_indices = @transform_0, window_bounds = array<i64: 8, 32>}, {pipeline_mode = #tpu.pipeline_mode<synchronous>, transform_indices = @transform_1, window_bounds = array<i64: 32, 32>}, {pipeline_mode = #tpu.pipeline_mode<synchronous>, transform_indices = @transform_2, window_bounds = array<i64: 1, 32>}, {pipeline_mode = #tpu.pipeline_mode<synchronous>, transform_indices = @transform_3, window_bounds = array<i64: 32, 64>}, {pipeline_mode = #tpu.pipeline_mode<synchronous>, transform_indices = @transform_4, window_bounds = array<i64: 1, 64>}, {pipeline_mode = #tpu.pipeline_mode<synchronous>, transform_indices = @transform_5, window_bounds = array<i64: 64, 16>}, {pipeline_mode = #tpu.pipeline_mode<synchronous>, transform_indices = @transform_6, window_bounds = array<i64: 1, 16>}, {transform_indices = @transform_7, window_bounds = array<i64: 8, 16>}]} {
    %c0 = arith.constant 0 : index
    %c0_0 = arith.constant 0 : index
    %0 = vector.load %arg1[%c0, %c0_0] : memref<8x32xf32, #tpu.memory_space<vmem>>, vector<8x32xf32>
    %1 = arith.truncf %0 : vector<8x32xf32> to vector<8x32xbf16>
    %c0_1 = arith.constant 0 : index
    %c0_2 = arith.constant 0 : index
    %2 = vector.load %arg2[%c0_1, %c0_2] : memref<32x32xbf16, #tpu.memory_space<vmem>>, vector<32x32xbf16>
    %cst = arith.constant dense<0.000000e+00> : vector<8x32xf32>
    %3 = tpu.matmul %1, %2, %cst {dimension_numbers = #tpu.dot_dimension_numbers<[1], [0], [0], [1], [0, 0, 1, 1], [], []>} : vector<8x32xbf16>, vector<32x32xbf16>, vector<8x32xf32> -> vector<8x32xf32>
    %c0_3 = arith.constant 0 : index
    %c0_4 = arith.constant 0 : index
    %4 = vector.load %arg3[%c0_3, %c0_4] : memref<1x32xf32, #tpu.memory_space<vmem>>, vector<1x32xf32>
    %5 = vector.broadcast %4 : vector<1x32xf32> to vector<8x32xf32>
    %6 = arith.addf %3, %5 : vector<8x32xf32>
    %cst_5 = arith.constant 0.000000e+00 : f32
    %7 = vector.broadcast %cst_5 : f32 to vector<8x32xf32>
    %8 = arith.maximumf %6, %7 : vector<8x32xf32>
    %9 = arith.truncf %8 : vector<8x32xf32> to vector<8x32xbf16>
    %c0_6 = arith.constant 0 : index
    %c0_7 = arith.constant 0 : index
    %10 = vector.load %arg4[%c0_6, %c0_7] : memref<32x64xbf16, #tpu.memory_space<vmem>>, vector<32x64xbf16>
    %cst_8 = arith.constant dense<0.000000e+00> : vector<8x64xf32>
    %11 = tpu.matmul %9, %10, %cst_8 {dimension_numbers = #tpu.dot_dimension_numbers<[1], [0], [0], [1], [0, 0, 1, 1], [], []>} : vector<8x32xbf16>, vector<32x64xbf16>, vector<8x64xf32> -> vector<8x64xf32>
    %c0_9 = arith.constant 0 : index
    %c0_10 = arith.constant 0 : index
    %12 = vector.load %arg5[%c0_9, %c0_10] : memref<1x64xf32, #tpu.memory_space<vmem>>, vector<1x64xf32>
    %13 = vector.broadcast %12 : vector<1x64xf32> to vector<8x64xf32>
    %14 = arith.addf %11, %13 : vector<8x64xf32>
    %cst_11 = arith.constant 0.000000e+00 : f32
    %15 = vector.broadcast %cst_11 : f32 to vector<8x64xf32>
    %16 = arith.maximumf %14, %15 : vector<8x64xf32>
    %17 = arith.truncf %16 : vector<8x64xf32> to vector<8x64xbf16>
    %c0_12 = arith.constant 0 : index
    %c0_13 = arith.constant 0 : index
    %18 = vector.load %arg6[%c0_12, %c0_13] : memref<64x16xbf16, #tpu.memory_space<vmem>>, vector<64x16xbf16>
    %cst_14 = arith.constant dense<0.000000e+00> : vector<8x16xf32>
    %19 = tpu.matmul %17, %18, %cst_14 {dimension_numbers = #tpu.dot_dimension_numbers<[1], [0], [0], [1], [0, 0, 1, 1], [], []>} : vector<8x64xbf16>, vector<64x16xbf16>, vector<8x16xf32> -> vector<8x16xf32>
    %c0_15 = arith.constant 0 : index
    %c0_16 = arith.constant 0 : index
    %20 = vector.load %arg7[%c0_15, %c0_16] : memref<1x16xf32, #tpu.memory_space<vmem>>, vector<1x16xf32>
    %21 = vector.broadcast %20 : vector<1x16xf32> to vector<8x16xf32>
    %22 = arith.addf %19, %21 : vector<8x16xf32>
    %23 = arith.negf %22 : vector<8x16xf32>
    %24 = math.exp %23 : vector<8x16xf32>
    %cst_17 = arith.constant 1.000000e+00 : f32
    %25 = vector.broadcast %cst_17 : f32 to vector<8x16xf32>
    %26 = arith.addf %25, %24 : vector<8x16xf32>
    %27 = arith.divf %25, %26 : vector<8x16xf32>
    %c0_18 = arith.constant 0 : index
    %c0_19 = arith.constant 0 : index
    %28 = vector.load %arg8[%c0_18, %c0_19] : memref<8x16xf32, #tpu.memory_space<vmem>>, vector<8x16xf32>
    tpu.vector_store %arg8[%c0_18, %c0_19], %27 {strides = array<i32>} : memref<8x16xf32, #tpu.memory_space<vmem>>, vector<8x16xf32>,
    return
  }
  func.func @transform_0(%arg0: i32) -> (i32, i32) {
    %c0_i32 = arith.constant 0 : i32
    %c0_i32_0 = arith.constant 0 : i32
    return %arg0, %c0_i32 : i32, i32
  }
  func.func @transform_1(%arg0: i32) -> (i32, i32) {
    %c0_i32 = arith.constant 0 : i32
    %c0_i32_0 = arith.constant 0 : i32
    %c0_i32_1 = arith.constant 0 : i32
    return %c0_i32, %c0_i32_0 : i32, i32
  }
  func.func @transform_2(%arg0: i32) -> (i32, i32) {
    %c0_i32 = arith.constant 0 : i32
    %c0_i32_0 = arith.constant 0 : i32
    %c0_i32_1 = arith.constant 0 : i32
    return %c0_i32, %c0_i32_0 : i32, i32
  }
  func.func @transform_3(%arg0: i32) -> (i32, i32) {
    %c0_i32 = arith.constant 0 : i32
    %c0_i32_0 = arith.constant 0 : i32
    %c0_i32_1 = arith.constant 0 : i32
    return %c0_i32, %c0_i32_0 : i32, i32
  }
  func.func @transform_4(%arg0: i32) -> (i32, i32) {
    %c0_i32 = arith.constant 0 : i32
    %c0_i32_0 = arith.constant 0 : i32
    %c0_i32_1 = arith.constant 0 : i32
    return %c0_i32, %c0_i32_0 : i32, i32
  }
  func.func @transform_5(%arg0: i32) -> (i32, i32) {
    %c0_i32 = arith.constant 0 : i32
    %c0_i32_0 = arith.constant 0 : i32
    %c0_i32_1 = arith.constant 0 : i32
    return %c0_i32, %c0_i32_0 : i32, i32
  }
  func.func @transform_6(%arg0: i32) -> (i32, i32) {
    %c0_i32 = arith.constant 0 : i32
    %c0_i32_0 = arith.constant 0 : i32
    %c0_i32_1 = arith.constant 0 : i32
    return %c0_i32, %c0_i32_0 : i32, i32
  }
  func.func @transform_7(%arg0: i32) -> (i32, i32) {
    %c0_i32 = arith.constant 0 : i32
    %c0_i32_0 = arith.constant 0 : i32
    return %arg0, %c0_i32 : i32, i32
  }
}

</mosaic_0001>

<bundles_post_ra>
// kernel: tpu_custom_call.1
= control target key start
LH: loop header
LB: loop body
LE: loop exit
PB: predicated region body
PF: predicated region fallthrough
CT: control target
= control target key end

     0   :  { %s355_s0 = inlined_call_operand.vmem [shape: f32[8,32], index: 0, kind: input, shape index: {}]   ;;  %s356_s1 = inlined_call_operand.vmem [shape: bf16[32,32], index: 1, kind: input, shape index: {}]   ;;  %s357_s2 = inlined_call_operand.vmem [shape: f32[1,32], index: 2, kind: input, shape index: {}]   ;;  %s358_s3 = inlined_call_operand.vmem [shape: bf16[32,64], index: 3, kind: input, shape index: {}]   ;;  %s359_s4 = inlined_call_operand.vmem [shape: f32[1,64], index: 4, kind: input, shape index: {}]   ;;  %s360_s5 = inlined_call_operand.vmem [shape: bf16[64,16], index: 5, kind: input, shape index: {}]   ;;  %s361_s6 = inlined_call_operand.vmem [shape: f32[1,16], index: 6, kind: input, shape index: {}]   ;;  %s362_s7 = inlined_call_operand.hbm [shape: f32[8,16], index: 7, kind: output, shape index: {}]  }
   0x1   :  { %v234_v0 = vld [vmem:[%s356_s1 + $0x8] sm:$0xff]  ;;  %v233_v1 = vld [vmem:[%s356_s1] sm:$0xff] }
   0x2   :  { %60 = vmatpush.bf16.msra.mxu0 %v234_v0  ;;  %v28_v2 = vld [vmem:[%s355_s0] sm:$0xff] }
   0x3   :  { %12 = vsyncpa [#allocation3], 0  ;;  %v29_v3 = vpack.c.bf16 %v28_v2, %v28_v2  ;;  %vm50_vm0 = vcmask 261120   ;;  %v236_v4 = vld [vmem:[%s358_s3 + $0x8] sm:$0xff]  ;;  %v235_v5 = vld [vmem:[%s358_s3] sm:$0xff]  ;;  %vm143_vm1 = vcmask 523264  }
   0x4   :  { %98 = vmatpush.bf16.msra.mxu1 %v236_v4  ;;  %v240_v6 = vld [vmem:[%s360_s5 + $0x18] sm:$0xff]  ;;  %v239_v7 = vld [vmem:[%s360_s5 + $0x10] sm:$0xff]  ;;  %v242_v8 = vld [vmem:[%s357_s2] ss:$0 sm:$0xff]  ;;  %vm179_vm5 = vcmask 130048  }
   0x5   :  { %151 = vmatpush.bf16.msra.mxu2 %v240_v6  ;;  %v238_v14 = vld [vmem:[%s360_s5 + $0x8] sm:$0xff]  ;;  %v237_v15 = vld [vmem:[%s360_s5] sm:$0xff] }
   0x6   :  { %61 = vmatpush.bf16.msra.mxu0 %v233_v1  ;;  %v243_v16 = vld [vmem:[%s359_s4] ss:$0 sm:$0xff]  ;;  %s275_s4 = smov [#allocation2]  }
   0x7   :  { %v244_v22 = vld [vmem:[%s361_s6] ss:$0 sm:$0xff]  ;;  %s186_s5 = sshll.u32 %s275_s4, 4  ;;  %s188_s6 = sshll.u32 %s362_s7, 4  ;;  %s187_s5 = int_to_ptr.vmem [resolvable:$true] %s186_s5  ;;  %s189_s6 = int_to_ptr.hbm [resolvable:$true] %s188_s6 }
   0x8   :  { %99 = vmatpush.bf16.msra.mxu1 %v235_v5 }
   0x9   :  { %205 = vmatmul.msk.bf16.vlgmr.msra.gmra.mxu0 %vm50_vm0, %v29_v3  ;;  %152 = vmatpush.bf16.msra.mxu2 %v239_v7 }
   0xd   :  { %153 = vmatpush.bf16.msra.mxu2 %v238_v14 }
  0x11   :  { %154 = vmatpush.bf16.msra.mxu2 %v237_v15 }
  0x86   :  { %v63_v9 = vpop.f32.mrf.mxu0 }
  0x87   :  { %v64_v10 = vadd.f32 %v242_v8, %v63_v9 }
  0x89   :  { %v67_v11 = vmax.f32 %v64_v10, 0.0 }
  0x8b   :  { %v68_v12 = vpack.c.bf16 %v67_v11, %v67_v11 }
  0x8d   :  { %214 = vmatmul.msk.bf16.vlgmr.msra.gmra.mxu1 %vm50_vm0, %v68_v12 }
  0x8e   :  { %v65_v13 = vpop.f32.mrf.mxu0 }
 0x10a   :  { %v101_v17 = vpop.f32.mrf.mxu1 }
 0x10b   :  { %v102_v18 = vadd.f32 %v243_v16, %v101_v17 }
 0x10d   :  { %v105_v19 = vmax.f32 %v102_v18, 0.0 }
 0x10f   :  { %v106_v20 = vpack.c.bf16 %v105_v19, %v105_v19 }
 0x111   :  { %231 = vmatmul.msk.bf16.vlgmr.msra.gmra.mxu2 %vm143_vm1, %v106_v20 }
 0x112   :  { %v103_v21 = vpop.f32.mrf.mxu1 }
 0x194   :  { %v156_v23 = vpop.f32.mrf.mxu2 }
 0x195   :  { %v157_v24 = vadd.f32 %v244_v22, %v156_v23 }
 0x197   :  { %v232_v25 = vmul.f32 -1.442695, %v157_v24 }
 0x199   :  { %245 = vpow2.f32 %v232_v25 }
 0x19c   :  { %v158_v26 = vpop.f32.mrf.mxu2 }
 0x19f   :  { %v246_v27 = vpop.eup %245 }
 0x1a0   :  { %v163_v28 = vadd.f32 1.0, %v246_v27 }
 0x1a2   :  { %247 = vrcp.f32 %v163_v28  ;;  %v175_v32 = vand.u32 2147483648, %v163_v28  ;;  %v173_v34 = vand.u32 2147483647, %v163_v28  ;;  %vm169_vm3 = vweird.f32 %v163_v28 }
 0x1a4   :  { %v176_v36 = vor.u32 1.1754944e-38, %v175_v32  ;;  %vm174_vm6 = vcmp.eq.f32.partialorder %v173_v34, 8.507059e+37 }
 0x1a8   :  { %v248_v29 = vpop.eup %247 }
 0x1a9   :  { %v165_v30 = vmul.f32 %v248_v29, %v163_v28  ;;  %vm170_vm2 = vweird.f32 %v248_v29 }
 0x1aa   :  { %vm171_vm4 = vmor %vm169_vm3, %vm170_vm2 }
 0x1ab   :  { %v166_v31 = vsub.f32 1.0, %v165_v30 }
 0x1ad   :  { %v167_v33 = vmul.f32 %v248_v29, %v166_v31 }
 0x1af   :  { %v168_v35 = vadd.f32 %v248_v29, %v167_v33 }
 0x1b1   :  { %v172_v37 = vsel %vm171_vm4, %v248_v29, %v168_v35 }
 0x1b2   :  { %v177_v38 = vsel %vm174_vm6, %v176_v36, %v172_v37 }
 0x1b3   :  { %180 = vst.msk [vmem:[#allocation2] sm:$0xff] %vm179_vm5, %v177_v38 }
 0x1b4   :  { %191 = dma.vmem_to_hbm [thread:$0]  %s187_s5, 128, %s189_s6, [#allocation3]  }
 0x1b5   :  { %273 = dma.done.wait [#allocation3], 128  }
 0x1b6   :  { %274 = vsyncadd [#allocation3], 4294967168 }
 0x1b7   :  { %196 = vsyncpa [#allocation3], 1 }

</bundles_post_ra>
